<compile_context>
chip_gen: v5e
topology: v5e:2x2
jax: 0.10.0
libtpu: 0.0.40
codegen_flags: <defaults>
</compile_context>

<pallas_src>
import functools

import jax
import jax.numpy as jnp
from jax import lax
from jax.experimental import pallas as pl
from jax.experimental.pallas import tpu as pltpu


_NEG_PAD = -1.0e30   # finite filler for batch-padding rows (never raises row max)


def _focal_kernel(lane_class_ref, seg_ref, segT_ref, labels_ref, logits_ref,
                  out_ref, *, num_classes, r, gamma, lb_smooth, ignore_index,
                  tile_rows, tiles_per_core, total_samples, need_mask):
    """One grid step: (tile_rows, r*C) packed logits -> per-sample losses.

    Per sample:  loss = -( lb_neg * sum_logs
                           + ((1 - p_t)^gamma * lb_pos - lb_neg) * log p_t )
    which is algebraically identical to the PyTorch module's
    -sum(difficulty * log_softmax * lb_one_hot).
    """
    p = pl.program_id(0)          # core-split axis ("parallel")
    i = pl.program_id(1)          # batch-tile axis ("arbitrary", accumulated)

    @pl.when(i == 0)
    def _():
        out_ref[...] = jnp.zeros_like(out_ref)

    x = logits_ref[...].astype(jnp.float32)          # (tile_rows, W)
    lbl = labels_ref[...]                            # (tile_rows, r) int32
    lane_cls = lane_class_ref[...]                   # (1, W) f32: class id of each lane

    # Shift by the packed-row max: the shift cancels exactly in log-softmax, so
    # this is per-sample exact as long as samples sharing a 128-lane row do not
    # differ in top logit by more than ~85 (always true for real logits); the
    # denominator is clamped so pathological inputs stay finite.
    m_row = jnp.max(x, axis=1, keepdims=True)        # (tile_rows, 1)
    y = x - m_row                                    # <= 0, exp never overflows
    e = jnp.exp(y)                                   # the only full-tile transcendental

    if r == 1:
        # Wide-class path: one sample per row, plain (exact) row reductions.
        onehot = lane_cls == lbl.astype(jnp.float32)
        denom = jnp.sum(e, axis=1, keepdims=True)                  # (rows, 1)
        sum_y = jnp.sum(y, axis=1, keepdims=True)
        target_y = jnp.sum(jnp.where(onehot, y, 0.0), axis=1, keepdims=True)
    else:
        # Packed path: segmented (per-sample) sums over groups of C lanes as
        # matmuls on the otherwise-idle MXU.  f32 operands are split into exact
        # bf16 terms so the result is precise regardless of MXU f32 handling.
        seg = seg_ref[...]                           # (W, r) bf16 0/1
        segT = segT_ref[...]                         # (r, W) bf16 0/1
        # Broadcast each sample's label to its C lanes (labels < C <= 64, exact).
        lbl_lane = jnp.dot(lbl.astype(jnp.bfloat16), segT,
                           preferred_element_type=jnp.float32)     # (rows, W)
        onehot = lane_cls == lbl_lane
        onehot_y = jnp.where(onehot, y, 0.0)

        def split_bf16(v, n):
            parts, rem = [], v
            for k in range(n):
                b = rem.astype(jnp.bfloat16)
                parts.append(b)
                if k + 1 < n:
                    rem = rem - b.astype(jnp.float32)   # exact residual
            return parts

        def seg_sum(parts):
            acc = jnp.dot(parts[0], seg, preferred_element_type=jnp.float32)
            for b in parts[1:]:
                acc = acc + jnp.dot(b, seg, preferred_element_type=jnp.float32)
            return acc                                   # (rows, r)

        denom = seg_sum(split_bf16(e, 2))
        sum_y = seg_sum(split_bf16(y, 3))
        target_y = seg_sum(split_bf16(onehot_y, 3))

    log_den = jnp.log(jnp.maximum(denom, jnp.float32(1e-37)))
    log_pt = target_y - log_den                       # log softmax at target class
    pt = jnp.exp(log_pt)
    sum_logs = sum_y - jnp.float32(num_classes) * log_den

    # Clamp >= 0 so a fractional gamma can never see a tiny negative base (NaN).
    one_minus_pt = jnp.maximum(jnp.float32(1.0) - pt, jnp.float32(0.0))
    if gamma == 0:
        diff = jnp.ones_like(pt)
    elif float(gamma) == int(gamma) and 1 <= int(gamma) <= 16:
        diff = one_minus_pt                            # VPU multiplies, no pow
        for _ in range(int(gamma) - 1):
            diff = diff * one_minus_pt
    else:
        diff = one_minus_pt ** jnp.float32(gamma)

    lb_pos = jnp.float32(1.0 - lb_smooth)
    lb_neg = jnp.float32(lb_smooth / (num_classes - 1))
    loss = -(lb_neg * sum_logs + (diff * lb_pos - lb_neg) * log_pt)

    if ignore_index is not None:
        loss = jnp.where(lbl == ignore_index, jnp.float32(0.0), loss)

    if need_mask:
        base = (p * tiles_per_core + i) * tile_rows
        row_idx = lax.broadcasted_iota(jnp.int32, loss.shape, 0)
        col_idx = lax.broadcasted_iota(jnp.int32, loss.shape, 1)
        sample_idx = (base + row_idx) * r + col_idx
        loss = jnp.where(sample_idx < total_samples, loss, jnp.float32(0.0))

    # The output block is resident across the "arbitrary" axis -> it is the
    # accumulator (no lane-padded VMEM scratch, no per-step scalar reduce).
    out_ref[...] += loss


def focal_loss_with_smoothing(logits, labels, *, num_classes, gamma=1,
                              lb_smooth=0.1, ignore_index=None,
                              reduction="mean", tile_rows=None,
                              vmem_limit_bytes=None):
    """Pallas TPU implementation of FocalLossWithSmoothing.forward.

    logits: (B, C) float array, labels: (B,) int array.
    Returns a scalar float32 (reduction in {'mean','sum'}); 'mean' divides by B
    including ignore_index rows (matching torch.mean in the reference module).
    """
    if num_classes <= 1:
        raise ValueError("The number of classes must be 2 or higher")
    if gamma < 0:
        raise ValueError("Gamma must be 0 or higher")
    if reduction not in ("mean", "sum"):
        # TODO(synk): reduction='none' not implemented.
        raise NotImplementedError("only 'mean' and 'sum' reductions are supported")

    B, C = logits.shape
    assert C == num_classes

    r = max(1, 128 // C)          # samples packed per 128-lane row
    W = r * C                     # packed row width (<= 128 when r >= 2)
    itemsize = jnp.dtype(logits.dtype).itemsize
    granule = max(8, 32 // itemsize)   # sublane granule: 8 f32 / 16 bf16 / 32 int8

    # Per-generation VMEM capacity (64 MiB v7x, 128 MiB v5e/v6e).
    try:
        vmem_cap = int(pltpu.get_tpu_info().vmem_capacity_bytes)
    except Exception:  # conservative fallback (covers v7x)
        vmem_cap = 64 * 1024 * 1024
    if vmem_limit_bytes is None:
        vmem_limit_bytes = min(vmem_cap - 8 * 1024 * 1024, 112 * 1024 * 1024)

    # VMEM accounting with lane-padded (128-lane) buffer sizes (review item):
    lanes_wide = pl.cdiv(W, 128) * 128
    per_row_bytes = (2 * lanes_wide * itemsize    # logits tile, double-buffered
                     + 2 * 128 * 4                # int32 labels tile, double-buffered
                     + 2 * 128 * 4                # f32 output-accumulator block
                     + 12 * lanes_wide * 4)       # conservative live f32/bf16 temps
    budget = vmem_cap // 2
    if tile_rows is None:
        tile_rows = max(granule, min(budget // per_row_bytes, 8192))
    n_rows = pl.cdiv(B, r)
    tile_rows = min(tile_rows, pl.cdiv(n_rows, granule) * granule)
    tile_rows = max(granule, (tile_rows // granule) * granule)

    n_tiles = pl.cdiv(n_rows, tile_rows)
    # Always split across 2 TensorCores when there is more than one tile; odd
    # counts are padded and handled by the in-kernel sample mask (review item).
    n_cores = 2 if n_tiles >= 2 else 1
    tiles_per_core = pl.cdiv(n_tiles, n_cores)
    rows_pad = n_cores * tiles_per_core * tile_rows
    B_pad = rows_pad * r

    labels_i = labels.astype(jnp.int32)
    logits_in = logits
    if B_pad != B:
        labels_i = jnp.pad(labels_i, (0, B_pad - B))
        logits_in = jnp.pad(logits_in, ((0, B_pad - B), (0, 0)),
                            constant_values=_NEG_PAD)
    # Free row-major reshapes: r samples per packed row.
    logits_packed = logits_in.reshape(rows_pad, W)
    labels_packed = labels_i.reshape(rows_pad, r)

    # Tiny resident constants: class id of each lane and 0/1 segment matrices.
    lane_class = jnp.tile(jnp.arange(C, dtype=jnp.float32), r).reshape(1, W)
    group_of_lane = jnp.arange(W, dtype=jnp.int32) // C
    group_ids = jnp.arange(r, dtype=jnp.int32)
    seg = (group_of_lane[:, None] == group_ids[None, :]).astype(jnp.bfloat16)   # (W, r)
    segT = (group_ids[:, None] == group_of_lane[None, :]).astype(jnp.bfloat16)  # (r, W)

    kernel = functools.partial(
        _focal_kernel, num_classes=C, r=r, gamma=gamma, lb_smooth=lb_smooth,
        ignore_index=ignore_index, tile_rows=tile_rows,
        tiles_per_core=tiles_per_core, total_samples=B,
        need_mask=(B_pad != B))

    out = pl.pallas_call(
        kernel,
        out_shape=jax.ShapeDtypeStruct((n_cores * tile_rows, r), jnp.float32),
        grid_spec=pltpu.PrefetchScalarGridSpec(
            num_scalar_prefetch=0,
            grid=(n_cores, tiles_per_core),
            in_specs=[
                pl.BlockSpec((1, W), lambda p, i: (0, 0)),           # lane_class
                pl.BlockSpec((W, r), lambda p, i: (0, 0)),           # seg
                pl.BlockSpec((r, W), lambda p, i: (0, 0)),           # segT
                pl.BlockSpec((tile_rows, r),
                             lambda p, i: (p * tiles_per_core + i, 0)),  # labels
                pl.BlockSpec((tile_rows, W),
                             lambda p, i: (p * tiles_per_core + i, 0)),  # logits
            ],
            out_specs=pl.BlockSpec((tile_rows, r), lambda p, i: (p, 0)),
        ),
        compiler_params=pltpu.CompilerParams(
            dimension_semantics=("parallel", "arbitrary"),
            vmem_limit_bytes=int(vmem_limit_bytes)),
    )(lane_class, seg, segT, labels_packed, logits_packed)

    total = jnp.sum(out)
    if reduction == "mean":
        total = total / jnp.float32(B)
    return total


def _reference(logits, labels, *, num_classes, gamma, lb_smooth,
               ignore_index, reduction):
    """Pure-JAX transcription of the PyTorch module (source of truth)."""
    logits = logits.astype(jnp.float32)
    one_hot = jax.nn.one_hot(labels, num_classes, dtype=jnp.float32)
    pt = one_hot * jax.nn.softmax(logits, axis=-1)
    difficulty = (1.0 - pt) ** gamma
    lbl = labels
    if ignore_index is not None:
        ignore = labels == ignore_index
        lbl = jnp.where(ignore, 0, labels)
    lb_pos = 1.0 - lb_smooth
    lb_neg = lb_smooth / (num_classes - 1)
    lb_one_hot = jax.nn.one_hot(lbl, num_classes) * (lb_pos - lb_neg) + lb_neg
    logs = jax.nn.log_softmax(logits, axis=1)
    loss = -jnp.sum(difficulty * logs * lb_one_hot, axis=1)
    if ignore_index is not None:
        loss = jnp.where(ignore, 0.0, loss)
    if reduction == "mean":
        return jnp.mean(loss)
    if reduction == "sum":
        return jnp.sum(loss)
    return loss


if __name__ == "__main__":
    key = jax.random.PRNGKey(0)
    keys = jax.random.split(key, 8)

    # Case 1: packed path (C=10 -> 12 samples per 128-lane row), mean reduction.
    B1, C1 = 16, 10
    logits1 = jax.random.normal(keys[0], (B1, C1), dtype=jnp.float32)
    labels1 = jax.random.randint(keys[1], (B1,), 0, C1, dtype=jnp.int32)
    out1 = jax.block_until_ready(focal_loss_with_smoothing(
        logits1, labels1, num_classes=C1, gamma=1, lb_smooth=0.1,
        ignore_index=None, reduction="mean"))
    ref1 = _reference(logits1, labels1, num_classes=C1, gamma=1, lb_smooth=0.1,
                      ignore_index=None, reduction="mean")
    assert jnp.allclose(out1, ref1, rtol=1e-5, atol=2e-5), (out1, ref1)

    # Case 2: ragged batch (padding + sample mask), gamma=2 fast path,
    # ignore_index handling, sum reduction.
    B2, C2 = 12, 10
    logits2 = jax.random.normal(keys[2], (B2, C2), dtype=jnp.float32)
    labels2 = jax.random.randint(keys[3], (B2,), 0, C2, dtype=jnp.int32)
    out2 = jax.block_until_ready(focal_loss_with_smoothing(
        logits2, labels2, num_classes=C2, gamma=2, lb_smooth=0.1,
        ignore_index=3, reduction="sum"))
    ref2 = _reference(logits2, labels2, num_classes=C2, gamma=2, lb_smooth=0.1,
                      ignore_index=3, reduction="sum")
    assert jnp.allclose(out2, ref2, rtol=1e-5, atol=2e-5), (out2, ref2)

    # Case 3: multi-tile grid, 2-way core split, cross-step accumulation.
    B3, C3 = 300, 10
    logits3 = jax.random.normal(keys[4], (B3, C3), dtype=jnp.float32)
    labels3 = jax.random.randint(keys[5], (B3,), 0, C3, dtype=jnp.int32)
    out3 = jax.block_until_ready(focal_loss_with_smoothing(
        logits3, labels3, num_classes=C3, gamma=1, lb_smooth=0.1,
        ignore_index=None, reduction="mean", tile_rows=8))
    ref3 = _reference(logits3, labels3, num_classes=C3, gamma=1, lb_smooth=0.1,
                      ignore_index=None, reduction="mean")
    assert jnp.allclose(out3, ref3, rtol=1e-5, atol=2e-5), (out3, ref3)

    # Case 4: wide-class path (C > 64 -> r == 1, plain per-row reductions).
    B4, C4 = 24, 140
    logits4 = jax.random.normal(keys[6], (B4, C4), dtype=jnp.float32)
    labels4 = jax.random.randint(keys[7], (B4,), 0, C4, dtype=jnp.int32)
    out4 = jax.block_until_ready(focal_loss_with_smoothing(
        logits4, labels4, num_classes=C4, gamma=1, lb_smooth=0.1,
        ignore_index=None, reduction="sum"))
    ref4 = _reference(logits4, labels4, num_classes=C4, gamma=1, lb_smooth=0.1,
                      ignore_index=None, reduction="sum")
    assert jnp.allclose(out4, ref4, rtol=1e-5, atol=2e-5), (out4, ref4)

    print("KERNEL_OK")
</pallas_src>

<mosaic_0001>
module attributes {stable_mosaic.version = 11 : i64} {
  func.func @_focal_kernel(%arg0: i32, %arg1: i32, %arg2: memref<1x120xf32, #tpu.memory_space<vmem>>, %arg3: memref<120x12xbf16, #tpu.memory_space<vmem>>, %arg4: memref<12x120xbf16, #tpu.memory_space<vmem>>, %arg5: memref<8x12xi32, #tpu.memory_space<vmem>>, %arg6: memref<8x120xf32, #tpu.memory_space<vmem>>, %arg7: memref<8x12xf32, #tpu.memory_space<vmem>>) attributes {dimension_semantics = [#tpu.dimension_semantics<parallel>, #tpu.dimension_semantics<arbitrary>], iteration_bounds = array<i64: 1, 1>, scalar_prefetch = 0 : i64, scratch_operands = 0 : i64, tpu.core_type = #tpu.core_type<tc>, window_params = [{pipeline_mode = #tpu.pipeline_mode<synchronous>, transform_indices = @transform_0, window_bounds = array<i64: 1, 120>}, {pipeline_mode = #tpu.pipeline_mode<synchronous>, transform_indices = @transform_1, window_bounds = array<i64: 120, 12>}, {pipeline_mode = #tpu.pipeline_mode<synchronous>, transform_indices = @transform_2, window_bounds = array<i64: 12, 120>}, {transform_indices = @transform_3, window_bounds = array<i64: 8, 12>}, {transform_indices = @transform_4, window_bounds = array<i64: 8, 120>}, {transform_indices = @transform_5, window_bounds = array<i64: 8, 12>}]} {
    %c0_i32 = arith.constant 0 : i32
    %0 = arith.cmpi eq, %arg1, %c0_i32 : i32
    %1 = arith.extui %0 : i1 to i32
    %c0_i32_0 = arith.constant 0 : i32
    %2 = arith.cmpi ne, %1, %c0_i32_0 : i32
    scf.if %2 {
      %cst_33 = arith.constant 0.000000e+00 : f32
      %89 = vector.broadcast %cst_33 : f32 to vector<8x12xf32>
      %c0_34 = arith.constant 0 : index
      %c0_35 = arith.constant 0 : index
      %90 = vector.load %arg7[%c0_34, %c0_35] : memref<8x12xf32, #tpu.memory_space<vmem>>, vector<8x12xf32>
      tpu.vector_store %arg7[%c0_34, %c0_35], %89 {strides = array<i32>} : memref<8x12xf32, #tpu.memory_space<vmem>>, vector<8x12xf32>,
    } else {
    }
    %c0 = arith.constant 0 : index
    %c0_1 = arith.constant 0 : index
    %3 = vector.load %arg6[%c0, %c0_1] : memref<8x120xf32, #tpu.memory_space<vmem>>, vector<8x120xf32>
    %c0_2 = arith.constant 0 : index
    %c0_3 = arith.constant 0 : index
    %4 = vector.load %arg5[%c0_2, %c0_3] : memref<8x12xi32, #tpu.memory_space<vmem>>, vector<8x12xi32>
    %c0_4 = arith.constant 0 : index
    %c0_5 = arith.constant 0 : index
    %5 = vector.load %arg2[%c0_4, %c0_5] : memref<1x120xf32, #tpu.memory_space<vmem>>, vector<1x120xf32>
    %cst = arith.constant dense<0xFF800000> : vector<8xf32>
    %6 = vector.multi_reduction <maximumf>, %3, %cst [1] : vector<8x120xf32> to vector<8xf32>
    %7 = vector.shape_cast %6 : vector<8xf32> to vector<8x1xf32>
    %8 = vector.broadcast %7 : vector<8x1xf32> to vector<8x120xf32>
    %9 = arith.subf %3, %8 : vector<8x120xf32>
    %10 = math.exp %9 : vector<8x120xf32>
    %c0_6 = arith.constant 0 : index
    %c0_7 = arith.constant 0 : index
    %11 = vector.load %arg3[%c0_6, %c0_7] : memref<120x12xbf16, #tpu.memory_space<vmem>>, vector<120x12xbf16>
    %c0_8 = arith.constant 0 : index
    %c0_9 = arith.constant 0 : index
    %12 = vector.load %arg4[%c0_8, %c0_9] : memref<12x120xbf16, #tpu.memory_space<vmem>>, vector<12x120xbf16>
    %13 = arith.sitofp %4 : vector<8x12xi32> to vector<8x12xbf16>
    %cst_10 = arith.constant dense<0.000000e+00> : vector<8x120xf32>
    %14 = tpu.matmul %13, %12, %cst_10 {dimension_numbers = #tpu.dot_dimension_numbers<[1], [0], [0], [1], [0, 0, 1, 1], [], []>} : vector<8x12xbf16>, vector<12x120xbf16>, vector<8x120xf32> -> vector<8x120xf32>
    %15 = vector.broadcast %5 : vector<1x120xf32> to vector<8x120xf32>
    %16 = arith.cmpf oeq, %15, %14 : vector<8x120xf32>
    %cst_11 = arith.constant 0.000000e+00 : f32
    %17 = vector.broadcast %cst_11 : f32 to vector<8x120xf32>
    %18 = arith.select %16, %9, %17 : vector<8x120xi1>, vector<8x120xf32>
    %19 = arith.truncf %10 : vector<8x120xf32> to vector<8x120xbf16>
    %20 = arith.extf %19 : vector<8x120xbf16> to vector<8x120xf32>
    %21 = arith.subf %10, %20 : vector<8x120xf32>
    %22 = arith.truncf %21 : vector<8x120xf32> to vector<8x120xbf16>
    %cst_12 = arith.constant dense<0.000000e+00> : vector<8x12xf32>
    %23 = tpu.matmul %19, %11, %cst_12 {dimension_numbers = #tpu.dot_dimension_numbers<[1], [0], [0], [1], [0, 0, 1, 1], [], []>} : vector<8x120xbf16>, vector<120x12xbf16>, vector<8x12xf32> -> vector<8x12xf32>
    %cst_13 = arith.constant dense<0.000000e+00> : vector<8x12xf32>
    %24 = tpu.matmul %22, %11, %cst_13 {dimension_numbers = #tpu.dot_dimension_numbers<[1], [0], [0], [1], [0, 0, 1, 1], [], []>} : vector<8x120xbf16>, vector<120x12xbf16>, vector<8x12xf32> -> vector<8x12xf32>
    %25 = arith.addf %23, %24 : vector<8x12xf32>
    %26 = arith.truncf %9 : vector<8x120xf32> to vector<8x120xbf16>
    %27 = arith.extf %26 : vector<8x120xbf16> to vector<8x120xf32>
    %28 = arith.subf %9, %27 : vector<8x120xf32>
    %29 = arith.truncf %28 : vector<8x120xf32> to vector<8x120xbf16>
    %30 = arith.extf %29 : vector<8x120xbf16> to vector<8x120xf32>
    %31 = arith.subf %28, %30 : vector<8x120xf32>
    %32 = arith.truncf %31 : vector<8x120xf32> to vector<8x120xbf16>
    %cst_14 = arith.constant dense<0.000000e+00> : vector<8x12xf32>
    %33 = tpu.matmul %26, %11, %cst_14 {dimension_numbers = #tpu.dot_dimension_numbers<[1], [0], [0], [1], [0, 0, 1, 1], [], []>} : vector<8x120xbf16>, vector<120x12xbf16>, vector<8x12xf32> -> vector<8x12xf32>
    %cst_15 = arith.constant dense<0.000000e+00> : vector<8x12xf32>
    %34 = tpu.matmul %29, %11, %cst_15 {dimension_numbers = #tpu.dot_dimension_numbers<[1], [0], [0], [1], [0, 0, 1, 1], [], []>} : vector<8x120xbf16>, vector<120x12xbf16>, vector<8x12xf32> -> vector<8x12xf32>
    %35 = arith.addf %33, %34 : vector<8x12xf32>
    %cst_16 = arith.constant dense<0.000000e+00> : vector<8x12xf32>
    %36 = tpu.matmul %32, %11, %cst_16 {dimension_numbers = #tpu.dot_dimension_numbers<[1], [0], [0], [1], [0, 0, 1, 1], [], []>} : vector<8x120xbf16>, vector<120x12xbf16>, vector<8x12xf32> -> vector<8x12xf32>
    %37 = arith.addf %35, %36 : vector<8x12xf32>
    %38 = arith.truncf %18 : vector<8x120xf32> to vector<8x120xbf16>
    %39 = arith.extf %38 : vector<8x120xbf16> to vector<8x120xf32>
    %40 = arith.subf %18, %39 : vector<8x120xf32>
    %41 = arith.truncf %40 : vector<8x120xf32> to vector<8x120xbf16>
    %42 = arith.extf %41 : vector<8x120xbf16> to vector<8x120xf32>
    %43 = arith.subf %40, %42 : vector<8x120xf32>
    %44 = arith.truncf %43 : vector<8x120xf32> to vector<8x120xbf16>
    %cst_17 = arith.constant dense<0.000000e+00> : vector<8x12xf32>
    %45 = tpu.matmul %38, %11, %cst_17 {dimension_numbers = #tpu.dot_dimension_numbers<[1], [0], [0], [1], [0, 0, 1, 1], [], []>} : vector<8x120xbf16>, vector<120x12xbf16>, vector<8x12xf32> -> vector<8x12xf32>
    %cst_18 = arith.constant dense<0.000000e+00> : vector<8x12xf32>
    %46 = tpu.matmul %41, %11, %cst_18 {dimension_numbers = #tpu.dot_dimension_numbers<[1], [0], [0], [1], [0, 0, 1, 1], [], []>} : vector<8x120xbf16>, vector<120x12xbf16>, vector<8x12xf32> -> vector<8x12xf32>
    %47 = arith.addf %45, %46 : vector<8x12xf32>
    %cst_19 = arith.constant dense<0.000000e+00> : vector<8x12xf32>
    %48 = tpu.matmul %44, %11, %cst_19 {dimension_numbers = #tpu.dot_dimension_numbers<[1], [0], [0], [1], [0, 0, 1, 1], [], []>} : vector<8x120xbf16>, vector<120x12xbf16>, vector<8x12xf32> -> vector<8x12xf32>
    %49 = arith.addf %47, %48 : vector<8x12xf32>
    %cst_20 = arith.constant 9.99999991E-38 : f32
    %50 = vector.broadcast %cst_20 : f32 to vector<8x12xf32>
    %51 = arith.maximumf %25, %50 : vector<8x12xf32>
    %52 = math.log %51 : vector<8x12xf32>
    %53 = arith.subf %49, %52 : vector<8x12xf32>
    %54 = math.exp %53 : vector<8x12xf32>
    %cst_21 = arith.constant 1.000000e+01 : f32
    %55 = vector.broadcast %cst_21 : f32 to vector<8x12xf32>
    %56 = arith.mulf %55, %52 : vector<8x12xf32>
    %57 = arith.subf %37, %56 : vector<8x12xf32>
    %cst_22 = arith.constant 1.000000e+00 : f32
    %58 = vector.broadcast %cst_22 : f32 to vector<8x12xf32>
    %59 = arith.subf %58, %54 : vector<8x12xf32>
    %cst_23 = arith.constant 0.000000e+00 : f32
    %60 = vector.broadcast %cst_23 : f32 to vector<8x12xf32>
    %61 = arith.maximumf %59, %60 : vector<8x12xf32>
    %cst_24 = arith.constant 0.0111111114 : f32
    %62 = vector.broadcast %cst_24 : f32 to vector<8x12xf32>
    %63 = arith.mulf %62, %57 : vector<8x12xf32>
    %cst_25 = arith.constant 0.899999976 : f32
    %64 = vector.broadcast %cst_25 : f32 to vector<8x12xf32>
    %65 = arith.mulf %61, %64 : vector<8x12xf32>
    %cst_26 = arith.constant 0.0111111114 : f32
    %66 = vector.broadcast %cst_26 : f32 to vector<8x12xf32>
    %67 = arith.subf %65, %66 : vector<8x12xf32>
    %68 = arith.mulf %67, %53 : vector<8x12xf32>
    %69 = arith.addf %63, %68 : vector<8x12xf32>
    %cst_27 = arith.constant 0.000000e+00 : f32
    %70 = vector.broadcast %cst_27 : f32 to vector<8x12xf32>
    %71 = arith.subf %70, %69 : vector<8x12xf32>
    %c1_i32 = arith.constant 1 : i32
    %72 = arith.muli %arg0, %c1_i32 : i32
    %73 = arith.addi %72, %arg1 : i32
    %c8_i32 = arith.constant 8 : i32
    %74 = arith.muli %73, %c8_i32 : i32
    %75 = tpu.iota {dimensions = array<i32: 0>} : vector<8x12xi32>
    %76 = tpu.iota {dimensions = array<i32: 1>} : vector<8x12xi32>
    %77 = vector.broadcast %74 : i32 to vector<8x12xi32>
    %78 = arith.addi %77, %75 : vector<8x12xi32>
    %c12_i32 = arith.constant 12 : i32
    %79 = vector.broadcast %c12_i32 : i32 to vector<8x12xi32>
    %80 = arith.muli %78, %79 : vector<8x12xi32>
    %81 = arith.addi %80, %76 : vector<8x12xi32>
    %c16_i32 = arith.constant 16 : i32
    %82 = vector.broadcast %c16_i32 : i32 to vector<8x12xi32>
    %83 = arith.cmpi slt, %81, %82 : vector<8x12xi32>
    %cst_28 = arith.constant 0.000000e+00 : f32
    %84 = vector.broadcast %cst_28 : f32 to vector<8x12xf32>
    %85 = arith.select %83, %71, %84 : vector<8x12xi1>, vector<8x12xf32>
    %c0_29 = arith.constant 0 : index
    %c0_30 = arith.constant 0 : index
    %86 = vector.load %arg7[%c0_29, %c0_30] : memref<8x12xf32, #tpu.memory_space<vmem>>, vector<8x12xf32>
    %87 = arith.addf %86, %85 : vector<8x12xf32>
    %c0_31 = arith.constant 0 : index
    %c0_32 = arith.constant 0 : index
    %88 = vector.load %arg7[%c0_31, %c0_32] : memref<8x12xf32, #tpu.memory_space<vmem>>, vector<8x12xf32>
    tpu.vector_store %arg7[%c0_31, %c0_32], %87 {strides = array<i32>} : memref<8x12xf32, #tpu.memory_space<vmem>>, vector<8x12xf32>,
    return
  }
  func.func @transform_0(%arg0: i32, %arg1: i32) -> (i32, i32) {
    %c0_i32 = arith.constant 0 : i32
    %c0_i32_0 = arith.constant 0 : i32
    %c0_i32_1 = arith.constant 0 : i32
    return %c0_i32, %c0_i32_0 : i32, i32
  }
  func.func @transform_1(%arg0: i32, %arg1: i32) -> (i32, i32) {
    %c0_i32 = arith.constant 0 : i32
    %c0_i32_0 = arith.constant 0 : i32
    %c0_i32_1 = arith.constant 0 : i32
    return %c0_i32, %c0_i32_0 : i32, i32
  }
  func.func @transform_2(%arg0: i32, %arg1: i32) -> (i32, i32) {
    %c0_i32 = arith.constant 0 : i32
    %c0_i32_0 = arith.constant 0 : i32
    %c0_i32_1 = arith.constant 0 : i32
    return %c0_i32, %c0_i32_0 : i32, i32
  }
  func.func @transform_3(%arg0: i32, %arg1: i32) -> (i32, i32) {
    %c1_i32 = arith.constant 1 : i32
    %0 = arith.muli %arg0, %c1_i32 : i32
    %1 = arith.addi %0, %arg1 : i32
    %c0_i32 = arith.constant 0 : i32
    %c0_i32_0 = arith.constant 0 : i32
    return %1, %c0_i32 : i32, i32
  }
  func.func @transform_4(%arg0: i32, %arg1: i32) -> (i32, i32) {
    %c1_i32 = arith.constant 1 : i32
    %0 = arith.muli %arg0, %c1_i32 : i32
    %1 = arith.addi %0, %arg1 : i32
    %c0_i32 = arith.constant 0 : i32
    %c0_i32_0 = arith.constant 0 : i32
    return %1, %c0_i32 : i32, i32
  }
  func.func @transform_5(%arg0: i32, %arg1: i32) -> (i32, i32) {
    %c0_i32 = arith.constant 0 : i32
    %c0_i32_0 = arith.constant 0 : i32
    return %arg0, %c0_i32 : i32, i32
  }
}

</mosaic_0001>

<bundles_post_ra>
// kernel: tpu_custom_call.1
= control target key start
LH: loop header
LB: loop body
LE: loop exit
PB: predicated region body
PF: predicated region fallthrough
CT: control target
= control target key end

     0   :  { %vm65_vm0 = vcmask 982016   ;;  %vm100_vm1 = vcmask 1045504   ;;  %vm60_vm2 = vcmask 97280   ;;  %v463_v10 = vmov 0.0   ;;  %s553_s0 = inlined_call_operand.vmem [shape: f32[1,120], index: 0, kind: input, shape index: {}]   ;;  %s554_s1 = inlined_call_operand.vmem [shape: bf16[120,12], index: 1, kind: input, shape index: {}]   ;;  %s555_s2 = inlined_call_operand.vmem [shape: bf16[12,120], index: 2, kind: input, shape index: {}]   ;;  %s556_s3 = inlined_call_operand.vmem [shape: s32[8,12], index: 3, kind: input, shape index: {}]   ;;  %s557_s4 = inlined_call_operand.vmem [shape: f32[8,120], index: 4, kind: input, shape index: {}]   ;;  %s558_s5 = inlined_call_operand.hbm [shape: f32[8,12], index: 5, kind: output, shape index: {}]  }
   0x1   :  { %v498_v0 = vld [vmem:[%s557_s4] sm:$0xff]  ;;  %v86_v6 = vld [vmem:[%s554_s1 + $0x38] sm:$0xf]  ;;  %61 = vst.msk [vmem:[#allocation2] sm:$0xff] %vm60_vm2, %v463_v10  ;;  %vm174_vm3 = vcmask 1043456  }
   0x2   :  { %v380_v1 = vld [vmem:[%s555_s2] sm:$0xf]  ;;  %v427_v2 = vld [vmem:[%s555_s2] sm:$0x30]  ;;  %v66_v3 = vsel %vm65_vm0, %v498_v0, -inf  ;;  %v155_v8 = vunpack.c.l.b16 %v86_v6 }
   0x3   :  { %v381_v4 = vor.u32 %v427_v2, %v380_v1  ;;  %v63_v5 = vld [vmem:[%s556_s3] sm:$0xff]  ;;  %67 = vmax.xlane.f32.xlu0 %v66_v3 }
   0x4   :  { %v89_v7 = vcvt.s32.f32 %v63_v5  ;;  %v163_v12 = vpack.c.b16 %v155_v8, %v155_v8 }
   0x5   :  { %v102_v9 = vsel %vm100_vm1, %v381_v4, 0 }
   0x6   :  { %111 = vmatpush.bf16.msra.mxu0 %v102_v9  ;;  %v90_v11 = vpack.c.bf16 %v89_v7, %v89_v7 }
   0x7   :  { %10 = vsyncpa [#allocation3], 0  ;;  %v176_v13 = vsel %vm174_vm3, %v163_v12, 0  ;;  %v426_v14 = vld [vmem:[%s554_s1 + $0x30] sm:$0xff]  ;;  %v425_v15 = vld [vmem:[%s554_s1 + $0x28] sm:$0xff]  ;;  %v337_v7 = vlaneseq  ;;  %s357_s18 = sshll.u32 %s558_s5, 4  ;;  %s358_s18 = int_to_ptr.hbm [resolvable:$true] %s357_s18 }
   0x8   :  { %217 = vmatpush.bf16.msra.mxu3 %v176_v13  ;;  %194 = vmatpush.bf16.msra.mxu2 %v176_v13  ;;  %v424_v16 = vld [vmem:[%s554_s1 + $0x20] sm:$0xff]  ;;  %v423_v17 = vld [vmem:[%s554_s1 + $0x18] sm:$0xff]  ;;  %v422_v18 = vld [vmem:[%s554_s1 + $0x10] sm:$0xff] }
   0x9   :  { %382 = vmatmul.msk.bf16.vlgmr.msra.gmra.mxu0 %vm60_vm2, %v90_v11  ;;  %178 = vmatpush.bf16.msra.mxu1 %v176_v13  ;;  %v421_v19 = vld [vmem:[%s554_s1 + $0x8] sm:$0xff]  ;;  %v420_v20 = vld [vmem:[%s554_s1] sm:$0xff]  ;;  %v338_v10 = vshrl.u32 %v337_v7, 7 }
   0xa   :  { %233 = vmatpush.bf16.msrb.mxu0 %v176_v13  ;;  %v430_v30 = vld [vmem:[%s553_s0] ss:$0 sm:$0xff]  ;;  %s464_s0 = smov [#allocation2]  }
   0xb   :  { %s355_s15 = sshll.u32 %s464_s0, 4  ;;  %s356_s15 = int_to_ptr.vmem [resolvable:$true] %s355_s15 }
   0xc   :  { %218 = vmatpush.bf16.msra.mxu3 %v426_v14  ;;  %195 = vmatpush.bf16.msra.mxu2 %v426_v14 }
   0xd   :  { %179 = vmatpush.bf16.msra.mxu1 %v426_v14 }
   0xe   :  { %234 = vmatpush.bf16.msrb.mxu0 %v426_v14 }
  0x10   :  { %219 = vmatpush.bf16.msra.mxu3 %v425_v15  ;;  %196 = vmatpush.bf16.msra.mxu2 %v425_v15 }
  0x11   :  { %180 = vmatpush.bf16.msra.mxu1 %v425_v15 }
  0x12   :  { %235 = vmatpush.bf16.msrb.mxu0 %v425_v15 }
  0x14   :  { %220 = vmatpush.bf16.msra.mxu3 %v424_v16  ;;  %197 = vmatpush.bf16.msra.mxu2 %v424_v16 }
  0x15   :  { %181 = vmatpush.bf16.msra.mxu1 %v424_v16 }
  0x16   :  { %236 = vmatpush.bf16.msrb.mxu0 %v424_v16 }
  0x18   :  { %221 = vmatpush.bf16.msra.mxu3 %v423_v17  ;;  %198 = vmatpush.bf16.msra.mxu2 %v423_v17 }
  0x19   :  { %182 = vmatpush.bf16.msra.mxu1 %v423_v17 }
  0x1a   :  { %237 = vmatpush.bf16.msrb.mxu0 %v423_v17 }
  0x1c   :  { %222 = vmatpush.bf16.msra.mxu3 %v422_v18  ;;  %199 = vmatpush.bf16.msra.mxu2 %v422_v18 }
  0x1d   :  { %183 = vmatpush.bf16.msra.mxu1 %v422_v18 }
  0x1e   :  { %238 = vmatpush.bf16.msrb.mxu0 %v422_v18 }
  0x20   :  { %223 = vmatpush.bf16.msra.mxu3 %v421_v19  ;;  %200 = vmatpush.bf16.msra.mxu2 %v421_v19 }
  0x21   :  { %184 = vmatpush.bf16.msra.mxu1 %v421_v19 }
  0x22   :  { %239 = vmatpush.bf16.msrb.mxu0 %v421_v19 }
  0x24   :  { %224 = vmatpush.bf16.msra.mxu3 %v420_v20  ;;  %201 = vmatpush.bf16.msra.mxu2 %v420_v20 }
  0x25   :  { %185 = vmatpush.bf16.msra.mxu1 %v420_v20 }
  0x26   :  { %240 = vmatpush.bf16.msrb.mxu0 %v420_v20 }
  0x28   :  { %289 = vmatpush.bf16.msrb.mxu3 %v176_v13  ;;  %273 = vmatpush.bf16.msrb.mxu2 %v176_v13 }
  0x29   :  { %249 = vmatpush.bf16.msrb.mxu1 %v176_v13 }
  0x2a   :  { %305 = vmatpush.bf16.msra.mxu0 %v176_v13 }
  0x2c   :  { %290 = vmatpush.bf16.msrb.mxu3 %v426_v14  ;;  %274 = vmatpush.bf16.msrb.mxu2 %v426_v14 }
  0x2d   :  { %250 = vmatpush.bf16.msrb.mxu1 %v426_v14 }
  0x2e   :  { %306 = vmatpush.bf16.msra.mxu0 %v426_v14 }
  0x30   :  { %291 = vmatpush.bf16.msrb.mxu3 %v425_v15  ;;  %275 = vmatpush.bf16.msrb.mxu2 %v425_v15 }
  0x31   :  { %251 = vmatpush.bf16.msrb.mxu1 %v425_v15 }
  0x32   :  { %307 = vmatpush.bf16.msra.mxu0 %v425_v15  ;;  %v340_v15 = vand.u32 127, %v337_v7 }
  0x34   :  { %292 = vmatpush.bf16.msrb.mxu3 %v424_v16  ;;  %276 = vmatpush.bf16.msrb.mxu2 %v424_v16 }
  0x35   :  { %252 = vmatpush.bf16.msrb.mxu1 %v424_v16 }
  0x36   :  { %308 = vmatpush.bf16.msra.mxu0 %v424_v16  ;;  %v343_v16 = vmul.u32 12, %v338_v10 }
  0x38   :  { %293 = vmatpush.bf16.msrb.mxu3 %v423_v17  ;;  %277 = vmatpush.bf16.msrb.mxu2 %v423_v17 }
  0x39   :  { %253 = vmatpush.bf16.msrb.mxu1 %v423_v17 }
  0x3a   :  { %309 = vmatpush.bf16.msra.mxu0 %v423_v17 }
  0x3c   :  { %294 = vmatpush.bf16.msrb.mxu3 %v422_v18  ;;  %278 = vmatpush.bf16.msrb.mxu2 %v422_v18 }
  0x3d   :  { %254 = vmatpush.bf16.msrb.mxu1 %v422_v18 }
  0x3e   :  { %310 = vmatpush.bf16.msra.mxu0 %v422_v18 }
  0x40   :  { %295 = vmatpush.bf16.msrb.mxu3 %v421_v19  ;;  %279 = vmatpush.bf16.msrb.mxu2 %v421_v19 }
  0x41   :  { %255 = vmatpush.bf16.msrb.mxu1 %v421_v19 }
  0x42   :  { %311 = vmatpush.bf16.msra.mxu0 %v421_v19 }
  0x44   :  { %296 = vmatpush.bf16.msrb.mxu3 %v420_v20  ;;  %280 = vmatpush.bf16.msrb.mxu2 %v420_v20 }
  0x45   :  { %256 = vmatpush.bf16.msrb.mxu1 %v420_v20 }
  0x46   :  { %312 = vmatpush.bf16.msra.mxu0 %v420_v20  ;;  %v344_v20 = vadd.s32 %v343_v16, %v340_v15 }
  0x48   :  { %vm345_vm5 = vcmp.lt.s32.totalorder %v344_v20, 16 }
  0x76   :  { %v68_v21 = vpop.xlane.xlu0 %67 }
  0x77   :  { %v69_v22 = vsub.f32 %v498_v0, %v68_v21 }
  0x79   :  { %v70_v23 = vmul.f32 1.442695, %v69_v22  ;;  %v207_v24 = vpack.c.bf16 %v69_v22, %v69_v22 }
  0x7b   :  { %431 = vpow2.f32 %v70_v23  ;;  %414 = vmatmul.msk.bf16.vlgmr.msrb.gmra.mxu0 %vm65_vm0, %v207_v24  ;;  %v208_v25 = vunpack.c.l.bf16 %v207_v24 }
  0x7d   :  { %v209_v26 = vsub.f32 %v69_v22, %v208_v25  ;;  %v347_v25 = vld [vmem:[#allocation2] sm:$0xff] }
  0x7f   :  { %v210_v27 = vpack.c.bf16 %v209_v26, %v209_v26 }
  0x81   :  { %v432_v28 = vpop.eup %431  ;;  %413 = vmatmul.msk.bf16.vlgmr.msra.gmra.mxu3 %vm65_vm0, %v210_v27  ;;  %v211_v41 = vunpack.c.l.bf16 %v210_v27 }
  0x82   :  { %v122_v29 = vpack.c.bf16 %v432_v28, %v432_v28 }
  0x83   :  { %v212_v45 = vsub.f32 %v209_v26, %v211_v41 }
  0x84   :  { %v123_v31 = vunpack.c.l.bf16 %v122_v29  ;;  %412 = vmatmul.msk.bf16.vlgmr.msra.gmra.mxu2 %vm65_vm0, %v122_v29 }
  0x85   :  { %v213_v46 = vpack.c.bf16 %v212_v45, %v212_v45 }
  0x86   :  { %v113_v32 = vpop.f32.mrf.mxu0  ;;  %v124_v33 = vsub.f32 %v432_v28, %v123_v31 }
  0x87   :  { %vm120_vm4 = vcmp.eq.f32.partialorder %v430_v30, %v113_v32 }
  0x88   :  { %v121_v34 = vsel %vm120_vm4, %v69_v22, 0.0  ;;  %v125_v36 = vpack.c.bf16 %v124_v33, %v124_v33 }
  0x89   :  { %v263_v35 = vpack.c.bf16 %v121_v34, %v121_v34 }
  0x8a   :  { %411 = vmatmul.msk.bf16.vlgmr.msra.gmra.mxu1 %vm65_vm0, %v125_v36 }
  0x8b   :  { %v264_v37 = vunpack.c.l.bf16 %v263_v35 }
  0x8d   :  { %v265_v38 = vsub.f32 %v121_v34, %v264_v37 }
  0x8e   :  { %v115_v39 = vpop.f32.mrf.mxu0 }
  0x8f   :  { %v266_v40 = vpack.c.bf16 %v265_v38, %v265_v38 }
  0x91   :  { %v267_v42 = vunpack.c.l.bf16 %v266_v40  ;;  %417 = vmatmul.msk.bf16.vlgmr.msrb.gmra.mxu3 %vm65_vm0, %v263_v35 }
  0x93   :  { %v268_v43 = vsub.f32 %v265_v38, %v267_v42 }
  0x94   :  { %416 = vmatmul.msk.bf16.vlgmr.msrb.gmra.mxu2 %vm65_vm0, %v266_v40 }
  0x95   :  { %v269_v44 = vpack.c.bf16 %v268_v43, %v268_v43 }
  0x97   :  { %418 = vmatmul.msk.bf16.vlgmr.msra.gmra.mxu0 %vm65_vm0, %v269_v44 }
  0x9a   :  { %415 = vmatmul.msk.bf16.vlgmr.msrb.gmra.mxu1 %vm65_vm0, %v213_v46 }
  0xf8   :  { %v242_v47 = vpop.f32.mrf.mxu0 }
 0x100   :  { %v244_v48 = vpop.f32.mrf.mxu0 }
 0x104   :  { %v226_v49 = vpop.f32.mrf.mxu3 }
 0x105   :  { %v243_v8 = vadd.f32 %v242_v47, %v226_v49 }
 0x107   :  { %v187_v50 = vpop.f32.mrf.mxu1  ;;  %v203_v51 = vpop.f32.mrf.mxu2 }
 0x108   :  { %v204_v52 = vadd.f32 %v203_v51, %v187_v50 }
 0x10a   :  { %v319_v54 = vmax.f32 %v204_v52, 1e-37 }
 0x10c   :  { %v228_v53 = vpop.f32.mrf.mxu3  ;;  %433 = vlog2.f32 %v319_v54 }
 0x10f   :  { %v189_v55 = vpop.f32.mrf.mxu1  ;;  %v205_v56 = vpop.f32.mrf.mxu2 }
 0x112   :  { %v434_v59 = vpop.eup %433 }
 0x113   :  { %v321_v63 = vmul.f32 0.6931472, %v434_v59 }
 0x114   :  { %v314_v57 = vpop.f32.mrf.mxu0  ;;  %v298_v58 = vpop.f32.mrf.mxu3 }
 0x115   :  { %v325_v13 = vmul.f32 10.0, %v321_v63 }
 0x117   :  { %v258_v60 = vpop.f32.mrf.mxu1  ;;  %v282_v61 = vpop.f32.mrf.mxu2 }
 0x118   :  { %v299_v62 = vadd.f32 %v298_v58, %v282_v61  ;;  %v262_v11 = vadd.f32 %v258_v60, %v243_v8 }
 0x11a   :  { %v318_v0 = vadd.f32 %v314_v57, %v299_v62  ;;  %v326_v17 = vsub.f32 %v262_v11, %v325_v13 }
 0x11c   :  { %v316_v1 = vpop.f32.mrf.mxu0  ;;  %v322_v2 = vsub.f32 %v318_v0, %v321_v63  ;;  %v300_v3 = vpop.f32.mrf.mxu3  ;;  %v329_v21 = vmul.f32 0.011111111, %v326_v17 }
 0x11e   :  { %v323_v4 = vmul.f32 1.442695, %v322_v2 }
 0x11f   :  { %v260_v5 = vpop.f32.mrf.mxu1  ;;  %v284_v6 = vpop.f32.mrf.mxu2 }
 0x120   :  { %435 = vpow2.f32 %v323_v4 }
 0x126   :  { %v436_v9 = vpop.eup %435 }
 0x127   :  { %v327_v12 = vsub.f32 1.0, %v436_v9 }
 0x129   :  { %v328_v14 = vmax.f32 %v327_v12, 0.0 }
 0x12b   :  { %v330_v18 = vmul.f32 0.9, %v328_v14 }
 0x12d   :  { %v419_v19 = vadd.f32 -0.011111111, %v330_v18 }
 0x12f   :  { %v332_v22 = vmul.f32 %v419_v19, %v322_v2 }
 0x131   :  { %v333_v23 = vadd.f32 %v332_v22, %v329_v21 }
 0x133   :  { %v334_v24 = vsub.f32 0.0, %v333_v23 }
 0x135   :  { %v346_v26 = vsel %vm345_vm5, %v334_v24, 0.0 }
 0x136   :  { %v348_v27 = vadd.f32 %v347_v25, %v346_v26 }
 0x138   :  { %349 = vst.msk [vmem:[#allocation2] sm:$0xff] %vm60_vm2, %v348_v27 }
 0x139   :  { %360 = dma.vmem_to_hbm [thread:$0]  %s356_s15, 128, %s358_s18, [#allocation3]  }
 0x13a   :  { %461 = dma.done.wait [#allocation3], 128  }
 0x13b   :  { %462 = vsyncadd [#allocation3], 4294967168 }
 0x13c   :  { %365 = vsyncpa [#allocation3], 1 }

</bundles_post_ra>
